<compile_context>
chip_gen: v7x
topology: tpu7x:2x2x1
jax: 0.10.0
libtpu: 0.0.40
codegen_flags: <defaults>
</compile_context>

<pallas_src>
import functools
import math

import jax
import jax.numpy as jnp
from jax.experimental import pallas as pl
from jax.experimental.pallas import tpu as pltpu


# ----------------------------------------------------------------------------
# one-time (loop-invariant) encoder projection: enc2d @ [Wk | Wv | Wk2/sqrt(H)]
# ----------------------------------------------------------------------------
def _encoder_projection_kernel(enc_ref, w_ref, out_ref):
    B, S, H = enc_ref.shape
    O = w_ref.shape[1]
    proj = jnp.dot(enc_ref[...].reshape(B * S, H), w_ref[...],
                   preferred_element_type=jnp.float32)
    out_ref[...] = proj.reshape(B, S, O)


def _encoder_projection(enc, w):
    B, S, H = enc.shape
    O = w.shape[1]
    vmem = pl.BlockSpec(memory_space=pltpu.MemorySpace.VMEM)
    return pl.pallas_call(
        _encoder_projection_kernel,
        out_shape=jax.ShapeDtypeStruct((B, S, O), jnp.float32),
        in_specs=[vmem, vmem],
        out_specs=vmem,
    )(enc, w)


# ----------------------------------------------------------------------------
# fused decoding-loop kernel: one grid step == one pointer-decoding step
# ----------------------------------------------------------------------------
def _decode_step_kernel(seed_ref,
                        enc_ref, first_ref, pool0_ref, demand_ref, cap0_ref,
                        k_ref, v_ref, k2_ref, sel_ref, selt_ref,
                        wfch_ref, wfcc_ref, wfc1_ref, wq_ref, wo_ref,
                        act_ref, logp_ref,
                        mask1_s, mask_s, cap_s, pool_s, inp_s,
                        *, n_heads, tanh_scale, greedy):
    f32 = jnp.float32
    step = pl.program_id(0)
    B, S, H = enc_ref.shape
    BIG = f32(1e30)

    demand = demand_ref[...]                     # (B, S)
    cap0 = cap0_ref[...]                         # (B, 1) full vehicle capacity
    iota_s = jax.lax.broadcasted_iota(jnp.int32, (B, S), 1)
    col0 = iota_s == 0

    # ---- step 0: initialise carried state (torch i==0 path + update_mask) --
    @pl.when(step == 0)
    def _():
        pool_s[...] = pool0_ref[...]
        cap_s[...] = cap0
        inp_s[...] = first_ref[...]              # encoder_inputs[:, 0, :]
        m1 = col0.astype(f32)                    # depot marked visited
        mask1_s[...] = m1
        mask_s[...] = jnp.maximum(m1, (demand > cap0).astype(f32))
        if not greedy:
            pltpu.prng_seed(seed_ref[0])

    mask1 = mask1_s[...]
    mask = mask_s[...]
    dyn_cap = cap_s[...]
    pool_cur = pool_s[...]
    cur_in = inp_s[...]

    # ---- decoder input: fc([input, cap]) + fc1(pool); (H+1) concat removed --
    pool_new = jnp.dot(pool_cur, wfc1_ref[...], preferred_element_type=f32)
    dec = (jnp.dot(cur_in, wfch_ref[...], preferred_element_type=f32)
           + dyn_cap * wfcc_ref[...]             # rank-1 capacity term (VPU)
           + pool_new)
    pool_s[...] = pool_new                       # torch: pool = fc1(pool)

    # ---- NaN-safe mask -------------------------------------------------------
    # TODO(synk): the reference breaks out of the loop once every customer is
    # visited (data-dependent break); here a fully-masked row falls back to
    # "stay at the depot" and its log-prob is zeroed by is_done as in torch.
    all_masked = jnp.sum(mask, axis=-1, keepdims=True) >= f32(S) - f32(0.5)
    maskf = jnp.where(jnp.logical_and(all_masked, col0), f32(0.0), mask)

    # ---- 8-head attention (head reductions via selector matmuls on the MXU) -
    q = jnp.dot(dec, wq_ref[...], preferred_element_type=f32)        # (B, H)
    k_all = k_ref[...]
    v_all = v_ref[...]
    prod = q[:, None, :] * k_all                                     # (B, S, H)
    scores = jnp.dot(prod.reshape(B * S, H), sel_ref[...],
                     preferred_element_type=f32).reshape(B, S, n_heads)
    scores = scores - maskf[:, :, None] * BIG
    m = jnp.max(scores, axis=1, keepdims=True)
    e = jnp.exp(scores - m)
    attn = e * pl.reciprocal(jnp.sum(e, axis=1, keepdims=True), approx=True)
    attn_full = jnp.dot(attn.reshape(B * S, n_heads), selt_ref[...],
                        preferred_element_type=f32).reshape(B, S, H)
    mha = jnp.sum(attn_full * v_all, axis=1)                         # (B, H)

    # ---- pointer scores (K2 pre-scaled by 1/sqrt(H); 10/T folded) ----------
    x = jnp.dot(mha, wo_ref[...], preferred_element_type=f32)        # (B, H)
    compat = jnp.sum(x[:, None, :] * k2_ref[...], axis=-1)           # (B, S)
    u = jnp.tanh(compat) * f32(tanh_scale) - maskf * BIG
    mu = jnp.max(u, axis=-1, keepdims=True)
    eu = jnp.exp(u - mu)
    p = eu * pl.reciprocal(jnp.sum(eu, axis=-1, keepdims=True), approx=True)

    # ---- node selection: greedy argmax or Gumbel-max categorical sample ----
    if greedy:
        sel = u
    else:
        bits = pltpu.bitcast(pltpu.prng_random_bits((B, S)), jnp.int32)
        u01 = pltpu.bitcast((bits & jnp.int32(0x007FFFFF))
                            | jnp.int32(0x3F800000), jnp.float32) - f32(1.0)
        sel = u - jnp.log(-jnp.log(u01 + f32(1e-9)))
    msel = jnp.max(sel, axis=-1, keepdims=True)
    index = jnp.min(jnp.where(sel >= msel, iota_s, jnp.int32(S)), axis=-1)

    onehot = (iota_s == index[:, None]).astype(f32)                  # (B, S)
    chosen_p = jnp.sum(onehot * p, axis=-1)                          # (B,)
    not_depot = f32(1.0) - col0.astype(f32)
    is_done = (jnp.sum(mask1 * not_depot, axis=-1) >= f32(S - 1)).astype(f32)
    log_p = jnp.log(chosen_p) * (f32(1.0) - is_done)

    act_ref[pl.ds(step, 1), :] = index[None, :]
    logp_ref[pl.ds(step, 1), :] = log_p[None, :]

    # ---- update_state: subtract served demand, refill at depot --------------
    go_depot = index == 0
    served = jnp.sum(onehot * demand, axis=-1, keepdims=True)        # (B, 1)
    new_cap = jnp.where(go_depot[:, None], cap0, dyn_cap - served)
    cap_s[...] = new_cap

    # ---- update_mask (reconstructed CVRP helper, same semantics as before) --
    mask1_new = jnp.maximum(mask1, onehot)
    depot_f = go_depot[:, None].astype(f32)
    mask1_new = jnp.where(jnp.logical_and(col0, step > 0), depot_f, mask1_new)
    mask1_s[...] = mask1_new
    mask_s[...] = jnp.maximum(mask1_new, (demand > new_cap).astype(f32))

    # ---- gather next node embedding: enc[b, index[b], :] ---------------------
    inp_s[...] = jnp.sum(onehot[:, :, None] * enc_ref[...], axis=1)


# ----------------------------------------------------------------------------
# GAT_Decoder forward
# ----------------------------------------------------------------------------
def gat_decoder_forward(params, encoder_inputs, pool, capacity, demand, seed,
                        n_steps, T, greedy, n_heads=8):
    f32 = jnp.float32
    B, S, H = encoder_inputs.shape
    hd = H // n_heads

    enc = encoder_inputs.astype(f32)
    pool = pool.astype(f32)
    demand = demand.astype(f32)

    # hoisted loop-invariant projections: enc @ [Wk | Wv | Wk2/sqrt(H)]
    w_kvk2 = jnp.concatenate(
        [params["wk"], params["wv"], params["wk2"] * f32(1.0 / math.sqrt(H))],
        axis=1).astype(f32)
    kvk2 = _encoder_projection(enc, w_kvk2)                  # (B, S, 3H)
    k_all = kvk2[..., :H]
    v_all = kvk2[..., H:2 * H]
    k2_all = kvk2[..., 2 * H:]

    # 0/1 head selector / expander so head reductions run on the MXU
    sel = (jnp.arange(H)[:, None] // hd
           == jnp.arange(n_heads)[None, :]).astype(f32)      # (H, n_heads)
    selt = sel.T                                             # (n_heads, H)

    wfc = params["wfc"].astype(f32)                          # (H+1, H)
    wfc_h, wfc_c = wfc[:H, :], wfc[H:, :]
    wq_s = params["wq"].astype(f32) * f32(1.0 / math.sqrt(hd))
    cap_b = jnp.broadcast_to(jnp.reshape(capacity, (1, 1)).astype(f32), (B, 1))
    first_node = enc[:, 0, :]

    kernel = functools.partial(_decode_step_kernel, n_heads=n_heads,
                               tanh_scale=10.0 / float(T), greedy=bool(greedy))

    def fixed(nd):
        return lambda i, s: (0,) * nd

    grid_spec = pltpu.PrefetchScalarGridSpec(
        num_scalar_prefetch=1,
        grid=(n_steps,),
        in_specs=[
            pl.BlockSpec((B, S, H), fixed(3)),      # encoder_inputs
            pl.BlockSpec((B, H), fixed(2)),         # enc[:, 0, :]
            pl.BlockSpec((B, H), fixed(2)),         # pool
            pl.BlockSpec((B, S), fixed(2)),         # demand
            pl.BlockSpec((B, 1), fixed(2)),         # full capacity
            pl.BlockSpec((B, S, H), fixed(3)),      # K   (hoisted)
            pl.BlockSpec((B, S, H), fixed(3)),      # V   (hoisted)
            pl.BlockSpec((B, S, H), fixed(3)),      # K2  (hoisted, pre-scaled)
            pl.BlockSpec((H, n_heads), fixed(2)),   # head selector
            pl.BlockSpec((n_heads, H), fixed(2)),   # head expander
            pl.BlockSpec((H, H), fixed(2)),         # wfc[:H]
            pl.BlockSpec((1, H), fixed(2)),         # wfc[H] capacity row
            pl.BlockSpec((H, H), fixed(2)),         # wfc1
            pl.BlockSpec((H, H), fixed(2)),         # wq (pre-scaled)
            pl.BlockSpec((H, H), fixed(2)),         # wo
        ],
        out_specs=[
            pl.BlockSpec((n_steps, B), fixed(2)),   # actions, step-major
            pl.BlockSpec((n_steps, B), fixed(2)),   # log-probs, step-major
        ],
        scratch_shapes=[
            pltpu.VMEM((B, S), f32),   # mask1 (visited)
            pltpu.VMEM((B, S), f32),   # mask  (visited | infeasible)
            pltpu.VMEM((B, 1), f32),   # dynamic capacity
            pltpu.VMEM((B, H), f32),   # pool carry (fc1 applied each step)
            pltpu.VMEM((B, H), f32),   # current node embedding
        ],
    )

    actions_t, logp_t = pl.pallas_call(
        kernel,
        grid_spec=grid_spec,
        out_shape=(jax.ShapeDtypeStruct((n_steps, B), jnp.int32),
                   jax.ShapeDtypeStruct((n_steps, B), f32)),
        compiler_params=pltpu.CompilerParams(
            dimension_semantics=("arbitrary",)),
    )(seed, enc, first_node, pool, demand, cap_b,
      k_all, v_all, k2_all, sel, selt,
      wfc_h, wfc_c, params["wfc1"].astype(f32), wq_s, params["wo"].astype(f32))

    actions = actions_t.T                        # (B, n_steps)
    log_p = jnp.sum(logp_t, axis=0)              # (B,)
    return actions, log_p


# ----------------------------------------------------------------------------
# deterministic Xavier-uniform parameter init (matches nn.init.xavier_uniform_)
# ----------------------------------------------------------------------------
def xavier_uniform(key, fan_in, fan_out):
    bound = math.sqrt(6.0 / (fan_in + fan_out))
    return jax.random.uniform(key, (fan_in, fan_out), jnp.float32, -bound, bound)


def init_params(key, hidden_dim):
    H = hidden_dim
    keys = jax.random.split(key, 7)
    return {
        "wfc":  xavier_uniform(keys[0], H + 1, H),   # fc:  (H+1) -> H, no bias
        "wfc1": xavier_uniform(keys[1], H, H),       # fc1: H -> H, no bias
        "wq":   xavier_uniform(keys[2], H, H),       # MHA Q
        "wk":   xavier_uniform(keys[3], H, H),       # MHA K
        "wv":   xavier_uniform(keys[4], H, H),       # MHA V
        "wo":   xavier_uniform(keys[5], H, H),       # MHA output proj
        "wk2":  xavier_uniform(keys[6], H, H),       # pointer K
    }


if __name__ == "__main__":
    key = jax.random.PRNGKey(0)
    k_param, k_enc, k_pool, k_dem = jax.random.split(key, 4)

    B, S, H = 2, 8, 32          # batch, seq (depot + 7 customers), hidden dim
    n_steps, T = 6, 1.0

    params = init_params(k_param, H)
    encoder_inputs = jax.random.normal(k_enc, (B, S, H), jnp.float32)
    pool = jax.random.normal(k_pool, (B, H), jnp.float32)
    capacity = jnp.array([30.0], jnp.float32)
    customer_demand = jax.random.uniform(k_dem, (B, S - 1), jnp.float32, 1.0, 9.0)
    demand = jnp.concatenate([jnp.zeros((B, 1), jnp.float32), customer_demand],
                             axis=1)
    seed = jnp.zeros((1,), jnp.int32)

    fwd = jax.jit(gat_decoder_forward,
                  static_argnames=("n_steps", "T", "greedy", "n_heads"))
    actions, log_p = fwd(params, encoder_inputs, pool, capacity, demand, seed,
                         n_steps=n_steps, T=T, greedy=True, n_heads=8)
    jax.block_until_ready((actions, log_p))

    assert actions.shape == (B, n_steps)
    assert log_p.shape == (B,)
    assert bool(jnp.all(jnp.isfinite(log_p)))
    print("KERNEL_OK")
</pallas_src>

<mosaic_0001>
module attributes {stable_mosaic.version = 11 : i64} {
  func.func @_encoder_projection_kernel(%arg0: memref<2x8x32xf32, #tpu.memory_space<vmem>>, %arg1: memref<32x96xf32, #tpu.memory_space<vmem>>, %arg2: memref<2x8x96xf32, #tpu.memory_space<vmem>>) attributes {dimension_semantics = [], scalar_prefetch = 0 : i64, scratch_operands = 0 : i64, tpu.core_type = #tpu.core_type<tc>} {
    %c0 = arith.constant 0 : index
    %c0_0 = arith.constant 0 : index
    %c0_1 = arith.constant 0 : index
    %0 = vector.load %arg0[%c0, %c0_0, %c0_1] : memref<2x8x32xf32, #tpu.memory_space<vmem>>, vector<2x8x32xf32>
    %1 = vector.shape_cast %0 : vector<2x8x32xf32> to vector<16x32xf32>
    %c0_2 = arith.constant 0 : index
    %c0_3 = arith.constant 0 : index
    %2 = vector.load %arg1[%c0_2, %c0_3] : memref<32x96xf32, #tpu.memory_space<vmem>>, vector<32x96xf32>
    %cst = arith.constant dense<0.000000e+00> : vector<16x96xf32>
    %3 = tpu.matmul %1, %2, %cst {dimension_numbers = #tpu.dot_dimension_numbers<[1], [0], [0], [1], [0, 0, 1, 1], [], []>} : vector<16x32xf32>, vector<32x96xf32>, vector<16x96xf32> -> vector<16x96xf32>
    %4 = vector.shape_cast %3 : vector<16x96xf32> to vector<2x8x96xf32>
    %c0_4 = arith.constant 0 : index
    %c0_5 = arith.constant 0 : index
    %c0_6 = arith.constant 0 : index
    %5 = vector.load %arg2[%c0_4, %c0_5, %c0_6] : memref<2x8x96xf32, #tpu.memory_space<vmem>>, vector<2x8x96xf32>
    tpu.vector_store %arg2[%c0_4, %c0_5, %c0_6], %4 {strides = array<i32>} : memref<2x8x96xf32, #tpu.memory_space<vmem>>, vector<2x8x96xf32>,
    return
  }
}

module attributes {stable_mosaic.version = 11 : i64} {
  func.func @_decode_step_kernel(%arg0: i32, %arg1: memref<1xi32, #tpu.memory_space<smem>>, %arg2: memref<2x8x32xf32, #tpu.memory_space<vmem>>, %arg3: memref<2x32xf32, #tpu.memory_space<vmem>>, %arg4: memref<2x32xf32, #tpu.memory_space<vmem>>, %arg5: memref<2x8xf32, #tpu.memory_space<vmem>>, %arg6: memref<2x1xf32, #tpu.memory_space<vmem>>, %arg7: memref<2x8x32xf32, #tpu.memory_space<vmem>>, %arg8: memref<2x8x32xf32, #tpu.memory_space<vmem>>, %arg9: memref<2x8x32xf32, #tpu.memory_space<vmem>>, %arg10: memref<32x8xf32, #tpu.memory_space<vmem>>, %arg11: memref<8x32xf32, #tpu.memory_space<vmem>>, %arg12: memref<32x32xf32, #tpu.memory_space<vmem>>, %arg13: memref<1x32xf32, #tpu.memory_space<vmem>>, %arg14: memref<32x32xf32, #tpu.memory_space<vmem>>, %arg15: memref<32x32xf32, #tpu.memory_space<vmem>>, %arg16: memref<32x32xf32, #tpu.memory_space<vmem>>, %arg17: memref<6x2xi32, #tpu.memory_space<vmem>>, %arg18: memref<6x2xf32, #tpu.memory_space<vmem>>, %arg19: memref<2x8xf32, #tpu.memory_space<vmem>>, %arg20: memref<2x8xf32, #tpu.memory_space<vmem>>, %arg21: memref<2x1xf32, #tpu.memory_space<vmem>>, %arg22: memref<2x32xf32, #tpu.memory_space<vmem>>, %arg23: memref<2x32xf32, #tpu.memory_space<vmem>>) attributes {dimension_semantics = [#tpu.dimension_semantics<arbitrary>], iteration_bounds = array<i64: 6>, scalar_prefetch = 1 : i64, scratch_operands = 5 : i64, tpu.core_type = #tpu.core_type<tc>, window_params = [{pipeline_mode = #tpu.pipeline_mode<synchronous>, transform_indices = @transform_0, window_bounds = array<i64: 2, 8, 32>}, {pipeline_mode = #tpu.pipeline_mode<synchronous>, transform_indices = @transform_1, window_bounds = array<i64: 2, 32>}, {pipeline_mode = #tpu.pipeline_mode<synchronous>, transform_indices = @transform_2, window_bounds = array<i64: 2, 32>}, {pipeline_mode = #tpu.pipeline_mode<synchronous>, transform_indices = @transform_3, window_bounds = array<i64: 2, 8>}, {pipeline_mode = #tpu.pipeline_mode<synchronous>, transform_indices = @transform_4, window_bounds = array<i64: 2, 1>}, {pipeline_mode = #tpu.pipeline_mode<synchronous>, transform_indices = @transform_5, window_bounds = array<i64: 2, 8, 32>}, {pipeline_mode = #tpu.pipeline_mode<synchronous>, transform_indices = @transform_6, window_bounds = array<i64: 2, 8, 32>}, {pipeline_mode = #tpu.pipeline_mode<synchronous>, transform_indices = @transform_7, window_bounds = array<i64: 2, 8, 32>}, {pipeline_mode = #tpu.pipeline_mode<synchronous>, transform_indices = @transform_8, window_bounds = array<i64: 32, 8>}, {pipeline_mode = #tpu.pipeline_mode<synchronous>, transform_indices = @transform_9, window_bounds = array<i64: 8, 32>}, {pipeline_mode = #tpu.pipeline_mode<synchronous>, transform_indices = @transform_10, window_bounds = array<i64: 32, 32>}, {pipeline_mode = #tpu.pipeline_mode<synchronous>, transform_indices = @transform_11, window_bounds = array<i64: 1, 32>}, {pipeline_mode = #tpu.pipeline_mode<synchronous>, transform_indices = @transform_12, window_bounds = array<i64: 32, 32>}, {pipeline_mode = #tpu.pipeline_mode<synchronous>, transform_indices = @transform_13, window_bounds = array<i64: 32, 32>}, {pipeline_mode = #tpu.pipeline_mode<synchronous>, transform_indices = @transform_14, window_bounds = array<i64: 32, 32>}, {pipeline_mode = #tpu.pipeline_mode<synchronous>, transform_indices = @transform_15, window_bounds = array<i64: 6, 2>}, {pipeline_mode = #tpu.pipeline_mode<synchronous>, transform_indices = @transform_16, window_bounds = array<i64: 6, 2>}]} {
    %c0 = arith.constant 0 : index
    %c0_0 = arith.constant 0 : index
    %0 = vector.load %arg5[%c0, %c0_0] : memref<2x8xf32, #tpu.memory_space<vmem>>, vector<2x8xf32>
    %c0_1 = arith.constant 0 : index
    %c0_2 = arith.constant 0 : index
    %1 = vector.load %arg6[%c0_1, %c0_2] : memref<2x1xf32, #tpu.memory_space<vmem>>, vector<2x1xf32>
    %2 = tpu.iota {dimensions = array<i32: 1>} : vector<2x8xi32>
    %c0_i32 = arith.constant 0 : i32
    %3 = vector.broadcast %c0_i32 : i32 to vector<2x8xi32>
    %4 = arith.cmpi eq, %2, %3 : vector<2x8xi32>
    %c0_i32_3 = arith.constant 0 : i32
    %5 = arith.cmpi eq, %arg0, %c0_i32_3 : i32
    %6 = arith.extui %5 : i1 to i32
    %c0_i32_4 = arith.constant 0 : i32
    %7 = arith.cmpi ne, %6, %c0_i32_4 : i32
    scf.if %7 {
      %c0_82 = arith.constant 0 : index
      %c0_83 = arith.constant 0 : index
      %154 = vector.load %arg4[%c0_82, %c0_83] : memref<2x32xf32, #tpu.memory_space<vmem>>, vector<2x32xf32>
      %c0_84 = arith.constant 0 : index
      %c0_85 = arith.constant 0 : index
      %155 = vector.load %arg22[%c0_84, %c0_85] : memref<2x32xf32, #tpu.memory_space<vmem>>, vector<2x32xf32>
      tpu.vector_store %arg22[%c0_84, %c0_85], %154 {strides = array<i32>} : memref<2x32xf32, #tpu.memory_space<vmem>>, vector<2x32xf32>,
      %c0_86 = arith.constant 0 : index
      %c0_87 = arith.constant 0 : index
      %156 = vector.load %arg21[%c0_86, %c0_87] : memref<2x1xf32, #tpu.memory_space<vmem>>, vector<2x1xf32>
      tpu.vector_store %arg21[%c0_86, %c0_87], %1 {strides = array<i32>} : memref<2x1xf32, #tpu.memory_space<vmem>>, vector<2x1xf32>,
      %c0_88 = arith.constant 0 : index
      %c0_89 = arith.constant 0 : index
      %157 = vector.load %arg3[%c0_88, %c0_89] : memref<2x32xf32, #tpu.memory_space<vmem>>, vector<2x32xf32>
      %c0_90 = arith.constant 0 : index
      %c0_91 = arith.constant 0 : index
      %158 = vector.load %arg23[%c0_90, %c0_91] : memref<2x32xf32, #tpu.memory_space<vmem>>, vector<2x32xf32>
      tpu.vector_store %arg23[%c0_90, %c0_91], %157 {strides = array<i32>} : memref<2x32xf32, #tpu.memory_space<vmem>>, vector<2x32xf32>,
      %159 = arith.extui %4 : vector<2x8xi1> to vector<2x8xi32>
      %160 = arith.sitofp %159 : vector<2x8xi32> to vector<2x8xf32>
      %c0_92 = arith.constant 0 : index
      %c0_93 = arith.constant 0 : index
      %161 = vector.load %arg19[%c0_92, %c0_93] : memref<2x8xf32, #tpu.memory_space<vmem>>, vector<2x8xf32>
      tpu.vector_store %arg19[%c0_92, %c0_93], %160 {strides = array<i32>} : memref<2x8xf32, #tpu.memory_space<vmem>>, vector<2x8xf32>,
      %162 = vector.broadcast %1 : vector<2x1xf32> to vector<2x8xf32>
      %163 = arith.cmpf ogt, %0, %162 : vector<2x8xf32>
      %164 = arith.extui %163 : vector<2x8xi1> to vector<2x8xi32>
      %165 = arith.sitofp %164 : vector<2x8xi32> to vector<2x8xf32>
      %166 = arith.maximumf %160, %165 : vector<2x8xf32>
      %c0_94 = arith.constant 0 : index
      %c0_95 = arith.constant 0 : index
      %167 = vector.load %arg20[%c0_94, %c0_95] : memref<2x8xf32, #tpu.memory_space<vmem>>, vector<2x8xf32>
      tpu.vector_store %arg20[%c0_94, %c0_95], %166 {strides = array<i32>} : memref<2x8xf32, #tpu.memory_space<vmem>>, vector<2x8xf32>,
    } else {
    }
    %c0_5 = arith.constant 0 : index
    %c0_6 = arith.constant 0 : index
    %8 = vector.load %arg19[%c0_5, %c0_6] : memref<2x8xf32, #tpu.memory_space<vmem>>, vector<2x8xf32>
    %c0_7 = arith.constant 0 : index
    %c0_8 = arith.constant 0 : index
    %9 = vector.load %arg20[%c0_7, %c0_8] : memref<2x8xf32, #tpu.memory_space<vmem>>, vector<2x8xf32>
    %c0_9 = arith.constant 0 : index
    %c0_10 = arith.constant 0 : index
    %10 = vector.load %arg21[%c0_9, %c0_10] : memref<2x1xf32, #tpu.memory_space<vmem>>, vector<2x1xf32>
    %c0_11 = arith.constant 0 : index
    %c0_12 = arith.constant 0 : index
    %11 = vector.load %arg22[%c0_11, %c0_12] : memref<2x32xf32, #tpu.memory_space<vmem>>, vector<2x32xf32>
    %c0_13 = arith.constant 0 : index
    %c0_14 = arith.constant 0 : index
    %12 = vector.load %arg23[%c0_13, %c0_14] : memref<2x32xf32, #tpu.memory_space<vmem>>, vector<2x32xf32>
    %c0_15 = arith.constant 0 : index
    %c0_16 = arith.constant 0 : index
    %13 = vector.load %arg14[%c0_15, %c0_16] : memref<32x32xf32, #tpu.memory_space<vmem>>, vector<32x32xf32>
    %cst = arith.constant dense<0.000000e+00> : vector<2x32xf32>
    %14 = tpu.matmul %11, %13, %cst {dimension_numbers = #tpu.dot_dimension_numbers<[1], [0], [0], [1], [0, 0, 1, 1], [], []>} : vector<2x32xf32>, vector<32x32xf32>, vector<2x32xf32> -> vector<2x32xf32>
    %c0_17 = arith.constant 0 : index
    %c0_18 = arith.constant 0 : index
    %15 = vector.load %arg12[%c0_17, %c0_18] : memref<32x32xf32, #tpu.memory_space<vmem>>, vector<32x32xf32>
    %cst_19 = arith.constant dense<0.000000e+00> : vector<2x32xf32>
    %16 = tpu.matmul %12, %15, %cst_19 {dimension_numbers = #tpu.dot_dimension_numbers<[1], [0], [0], [1], [0, 0, 1, 1], [], []>} : vector<2x32xf32>, vector<32x32xf32>, vector<2x32xf32> -> vector<2x32xf32>
    %c0_20 = arith.constant 0 : index
    %c0_21 = arith.constant 0 : index
    %17 = vector.load %arg13[%c0_20, %c0_21] : memref<1x32xf32, #tpu.memory_space<vmem>>, vector<1x32xf32>
    %18 = vector.broadcast %10 : vector<2x1xf32> to vector<2x32xf32>
    %19 = vector.broadcast %17 : vector<1x32xf32> to vector<2x32xf32>
    %20 = arith.mulf %18, %19 : vector<2x32xf32>
    %21 = arith.addf %16, %20 : vector<2x32xf32>
    %22 = arith.addf %21, %14 : vector<2x32xf32>
    %c0_22 = arith.constant 0 : index
    %c0_23 = arith.constant 0 : index
    %23 = vector.load %arg22[%c0_22, %c0_23] : memref<2x32xf32, #tpu.memory_space<vmem>>, vector<2x32xf32>
    tpu.vector_store %arg22[%c0_22, %c0_23], %14 {strides = array<i32>} : memref<2x32xf32, #tpu.memory_space<vmem>>, vector<2x32xf32>,
    %cst_24 = arith.constant dense<0.000000e+00> : vector<2xf32>
    %24 = vector.multi_reduction <add>, %9, %cst_24 [1] : vector<2x8xf32> to vector<2xf32>
    %25 = vector.shape_cast %24 : vector<2xf32> to vector<2x1xf32>
    %cst_25 = arith.constant 8.000000e+00 : f32
    %cst_26 = arith.constant 5.000000e-01 : f32
    %26 = arith.subf %cst_25, %cst_26 : f32
    %27 = vector.broadcast %26 : f32 to vector<2x1xf32>
    %28 = arith.cmpf oge, %25, %27 : vector<2x1xf32>
    %29 = vector.broadcast %28 : vector<2x1xi1> to vector<2x8xi1>
    %30 = arith.andi %29, %4 : vector<2x8xi1>
    %cst_27 = arith.constant 0.000000e+00 : f32
    %31 = vector.broadcast %cst_27 : f32 to vector<2x8xf32>
    %32 = arith.select %30, %31, %9 : vector<2x8xi1>, vector<2x8xf32>
    %c0_28 = arith.constant 0 : index
    %c0_29 = arith.constant 0 : index
    %33 = vector.load %arg15[%c0_28, %c0_29] : memref<32x32xf32, #tpu.memory_space<vmem>>, vector<32x32xf32>
    %cst_30 = arith.constant dense<0.000000e+00> : vector<2x32xf32>
    %34 = tpu.matmul %22, %33, %cst_30 {dimension_numbers = #tpu.dot_dimension_numbers<[1], [0], [0], [1], [0, 0, 1, 1], [], []>} : vector<2x32xf32>, vector<32x32xf32>, vector<2x32xf32> -> vector<2x32xf32>
    %c0_31 = arith.constant 0 : index
    %c0_32 = arith.constant 0 : index
    %c0_33 = arith.constant 0 : index
    %35 = vector.load %arg7[%c0_31, %c0_32, %c0_33] : memref<2x8x32xf32, #tpu.memory_space<vmem>>, vector<2x8x32xf32>
    %c0_34 = arith.constant 0 : index
    %c0_35 = arith.constant 0 : index
    %c0_36 = arith.constant 0 : index
    %36 = vector.load %arg8[%c0_34, %c0_35, %c0_36] : memref<2x8x32xf32, #tpu.memory_space<vmem>>, vector<2x8x32xf32>
    %37 = vector.shape_cast %34 : vector<2x32xf32> to vector<2x1x32xf32>
    %38 = vector.broadcast %37 : vector<2x1x32xf32> to vector<2x8x32xf32>
    %39 = arith.mulf %38, %35 : vector<2x8x32xf32>
    %40 = vector.shape_cast %39 : vector<2x8x32xf32> to vector<16x32xf32>
    %c0_37 = arith.constant 0 : index
    %c0_38 = arith.constant 0 : index
    %41 = vector.load %arg10[%c0_37, %c0_38] : memref<32x8xf32, #tpu.memory_space<vmem>>, vector<32x8xf32>
    %cst_39 = arith.constant dense<0.000000e+00> : vector<16x8xf32>
    %42 = tpu.matmul %40, %41, %cst_39 {dimension_numbers = #tpu.dot_dimension_numbers<[1], [0], [0], [1], [0, 0, 1, 1], [], []>} : vector<16x32xf32>, vector<32x8xf32>, vector<16x8xf32> -> vector<16x8xf32>
    %43 = vector.shape_cast %42 : vector<16x8xf32> to vector<2x8x8xf32>
    %44 = vector.shape_cast %32 : vector<2x8xf32> to vector<2x8x1xf32>
    %cst_40 = arith.constant 1.000000e+30 : f32
    %45 = vector.broadcast %cst_40 : f32 to vector<2x8x1xf32>
    %46 = arith.mulf %44, %45 : vector<2x8x1xf32>
    %47 = vector.broadcast %46 : vector<2x8x1xf32> to vector<2x8x8xf32>
    %48 = arith.subf %43, %47 : vector<2x8x8xf32>
    %cst_41 = arith.constant dense<0xFF800000> : vector<2x8xf32>
    %49 = vector.multi_reduction <maximumf>, %48, %cst_41 [1] : vector<2x8x8xf32> to vector<2x8xf32>
    %50 = vector.shape_cast %49 : vector<2x8xf32> to vector<2x1x8xf32>
    %51 = vector.broadcast %50 : vector<2x1x8xf32> to vector<2x8x8xf32>
    %52 = arith.subf %48, %51 : vector<2x8x8xf32>
    %53 = math.exp %52 : vector<2x8x8xf32>
    %cst_42 = arith.constant dense<0.000000e+00> : vector<2x8xf32>
    %54 = vector.multi_reduction <add>, %53, %cst_42 [1] : vector<2x8x8xf32> to vector<2x8xf32>
    %55 = vector.shape_cast %54 : vector<2x8xf32> to vector<2x1x8xf32>
    %56 = tpu.reciprocal %55 {approx = true} : vector<2x1x8xf32> -> vector<2x1x8xf32>
    %57 = vector.broadcast %56 : vector<2x1x8xf32> to vector<2x8x8xf32>
    %58 = arith.mulf %53, %57 : vector<2x8x8xf32>
    %59 = vector.shape_cast %58 : vector<2x8x8xf32> to vector<16x8xf32>
    %c0_43 = arith.constant 0 : index
    %c0_44 = arith.constant 0 : index
    %60 = vector.load %arg11[%c0_43, %c0_44] : memref<8x32xf32, #tpu.memory_space<vmem>>, vector<8x32xf32>
    %cst_45 = arith.constant dense<0.000000e+00> : vector<16x32xf32>
    %61 = tpu.matmul %59, %60, %cst_45 {dimension_numbers = #tpu.dot_dimension_numbers<[1], [0], [0], [1], [0, 0, 1, 1], [], []>} : vector<16x8xf32>, vector<8x32xf32>, vector<16x32xf32> -> vector<16x32xf32>
    %62 = vector.shape_cast %61 : vector<16x32xf32> to vector<2x8x32xf32>
    %63 = arith.mulf %62, %36 : vector<2x8x32xf32>
    %cst_46 = arith.constant dense<0.000000e+00> : vector<2x32xf32>
    %64 = vector.multi_reduction <add>, %63, %cst_46 [1] : vector<2x8x32xf32> to vector<2x32xf32>
    %c0_47 = arith.constant 0 : index
    %c0_48 = arith.constant 0 : index
    %65 = vector.load %arg16[%c0_47, %c0_48] : memref<32x32xf32, #tpu.memory_space<vmem>>, vector<32x32xf32>
    %cst_49 = arith.constant dense<0.000000e+00> : vector<2x32xf32>
    %66 = tpu.matmul %64, %65, %cst_49 {dimension_numbers = #tpu.dot_dimension_numbers<[1], [0], [0], [1], [0, 0, 1, 1], [], []>} : vector<2x32xf32>, vector<32x32xf32>, vector<2x32xf32> -> vector<2x32xf32>
    %67 = vector.shape_cast %66 : vector<2x32xf32> to vector<2x1x32xf32>
    %c0_50 = arith.constant 0 : index
    %c0_51 = arith.constant 0 : index
    %c0_52 = arith.constant 0 : index
    %68 = vector.load %arg9[%c0_50, %c0_51, %c0_52] : memref<2x8x32xf32, #tpu.memory_space<vmem>>, vector<2x8x32xf32>
    %69 = vector.broadcast %67 : vector<2x1x32xf32> to vector<2x8x32xf32>
    %70 = arith.mulf %69, %68 : vector<2x8x32xf32>
    %cst_53 = arith.constant dense<0.000000e+00> : vector<2x8xf32>
    %71 = vector.multi_reduction <add>, %70, %cst_53 [2] : vector<2x8x32xf32> to vector<2x8xf32>
    %72 = math.tanh %71 : vector<2x8xf32>
    %cst_54 = arith.constant 1.000000e+01 : f32
    %73 = vector.broadcast %cst_54 : f32 to vector<2x8xf32>
    %74 = arith.mulf %72, %73 : vector<2x8xf32>
    %cst_55 = arith.constant 1.000000e+30 : f32
    %75 = vector.broadcast %cst_55 : f32 to vector<2x8xf32>
    %76 = arith.mulf %32, %75 : vector<2x8xf32>
    %77 = arith.subf %74, %76 : vector<2x8xf32>
    %cst_56 = arith.constant dense<0xFF800000> : vector<2xf32>
    %78 = vector.multi_reduction <maximumf>, %77, %cst_56 [1] : vector<2x8xf32> to vector<2xf32>
    %79 = vector.shape_cast %78 : vector<2xf32> to vector<2x1xf32>
    %80 = vector.broadcast %79 : vector<2x1xf32> to vector<2x8xf32>
    %81 = arith.subf %77, %80 : vector<2x8xf32>
    %82 = math.exp %81 : vector<2x8xf32>
    %cst_57 = arith.constant dense<0.000000e+00> : vector<2xf32>
    %83 = vector.multi_reduction <add>, %82, %cst_57 [1] : vector<2x8xf32> to vector<2xf32>
    %84 = vector.shape_cast %83 : vector<2xf32> to vector<2x1xf32>
    %85 = tpu.reciprocal %84 {approx = true} : vector<2x1xf32> -> vector<2x1xf32>
    %86 = vector.broadcast %85 : vector<2x1xf32> to vector<2x8xf32>
    %87 = arith.mulf %82, %86 : vector<2x8xf32>
    %cst_58 = arith.constant dense<0xFF800000> : vector<2xf32>
    %88 = vector.multi_reduction <maximumf>, %77, %cst_58 [1] : vector<2x8xf32> to vector<2xf32>
    %89 = vector.shape_cast %88 : vector<2xf32> to vector<2x1xf32>
    %90 = vector.broadcast %89 : vector<2x1xf32> to vector<2x8xf32>
    %91 = arith.cmpf oge, %77, %90 : vector<2x8xf32>
    %c8_i32 = arith.constant 8 : i32
    %92 = vector.broadcast %c8_i32 : i32 to vector<2x8xi32>
    %93 = arith.select %91, %2, %92 : vector<2x8xi1>, vector<2x8xi32>
    %cst_59 = arith.constant dense<2147483647> : vector<2xi32>
    %94 = vector.multi_reduction <minsi>, %93, %cst_59 [1] : vector<2x8xi32> to vector<2xi32>
    %95 = vector.shape_cast %94 : vector<2xi32> to vector<2x1xi32>
    %96 = vector.broadcast %95 : vector<2x1xi32> to vector<2x8xi32>
    %97 = arith.cmpi eq, %2, %96 : vector<2x8xi32>
    %98 = arith.extui %97 : vector<2x8xi1> to vector<2x8xi32>
    %99 = arith.sitofp %98 : vector<2x8xi32> to vector<2x8xf32>
    %100 = arith.mulf %99, %87 : vector<2x8xf32>
    %cst_60 = arith.constant dense<0.000000e+00> : vector<2xf32>
    %101 = vector.multi_reduction <add>, %100, %cst_60 [1] : vector<2x8xf32> to vector<2xf32>
    %102 = arith.extui %4 : vector<2x8xi1> to vector<2x8xi32>
    %103 = arith.sitofp %102 : vector<2x8xi32> to vector<2x8xf32>
    %cst_61 = arith.constant 1.000000e+00 : f32
    %104 = vector.broadcast %cst_61 : f32 to vector<2x8xf32>
    %105 = arith.subf %104, %103 : vector<2x8xf32>
    %106 = arith.mulf %8, %105 : vector<2x8xf32>
    %cst_62 = arith.constant dense<0.000000e+00> : vector<2xf32>
    %107 = vector.multi_reduction <add>, %106, %cst_62 [1] : vector<2x8xf32> to vector<2xf32>
    %cst_63 = arith.constant 7.000000e+00 : f32
    %108 = vector.broadcast %cst_63 : f32 to vector<2xf32>
    %109 = arith.cmpf oge, %107, %108 : vector<2xf32>
    %110 = arith.extui %109 : vector<2xi1> to vector<2xi32>
    %111 = arith.sitofp %110 : vector<2xi32> to vector<2xf32>
    %112 = math.log %101 : vector<2xf32>
    %cst_64 = arith.constant 1.000000e+00 : f32
    %113 = vector.broadcast %cst_64 : f32 to vector<2xf32>
    %114 = arith.subf %113, %111 : vector<2xf32>
    %115 = arith.mulf %112, %114 : vector<2xf32>
    %116 = vector.shape_cast %94 : vector<2xi32> to vector<1x2xi32>
    %117 = arith.index_cast %arg0 : i32 to index
    %c0_65 = arith.constant 0 : index
    %118 = vector.load %arg17[%117, %c0_65] : memref<6x2xi32, #tpu.memory_space<vmem>>, vector<1x2xi32>
    tpu.vector_store %arg17[%117, %c0_65], %116 {strides = array<i32>} : memref<6x2xi32, #tpu.memory_space<vmem>>, vector<1x2xi32>,
    %119 = vector.shape_cast %115 : vector<2xf32> to vector<1x2xf32>
    %120 = arith.index_cast %arg0 : i32 to index
    %c0_66 = arith.constant 0 : index
    %121 = vector.load %arg18[%120, %c0_66] : memref<6x2xf32, #tpu.memory_space<vmem>>, vector<1x2xf32>
    tpu.vector_store %arg18[%120, %c0_66], %119 {strides = array<i32>} : memref<6x2xf32, #tpu.memory_space<vmem>>, vector<1x2xf32>,
    %c0_i32_67 = arith.constant 0 : i32
    %122 = vector.broadcast %c0_i32_67 : i32 to vector<2xi32>
    %123 = arith.cmpi eq, %94, %122 : vector<2xi32>
    %124 = arith.mulf %99, %0 : vector<2x8xf32>
    %cst_68 = arith.constant dense<0.000000e+00> : vector<2xf32>
    %125 = vector.multi_reduction <add>, %124, %cst_68 [1] : vector<2x8xf32> to vector<2xf32>
    %126 = vector.shape_cast %125 : vector<2xf32> to vector<2x1xf32>
    %127 = vector.shape_cast %123 : vector<2xi1> to vector<2x1xi1>
    %128 = arith.subf %10, %126 : vector<2x1xf32>
    %129 = arith.select %127, %1, %128 : vector<2x1xi1>, vector<2x1xf32>
    %c0_69 = arith.constant 0 : index
    %c0_70 = arith.constant 0 : index
    %130 = vector.load %arg21[%c0_69, %c0_70] : memref<2x1xf32, #tpu.memory_space<vmem>>, vector<2x1xf32>
    tpu.vector_store %arg21[%c0_69, %c0_70], %129 {strides = array<i32>} : memref<2x1xf32, #tpu.memory_space<vmem>>, vector<2x1xf32>,
    %131 = arith.maximumf %8, %99 : vector<2x8xf32>
    %132 = vector.shape_cast %123 : vector<2xi1> to vector<2x1xi1>
    %133 = arith.extui %132 : vector<2x1xi1> to vector<2x1xi32>
    %134 = arith.sitofp %133 : vector<2x1xi32> to vector<2x1xf32>
    %c0_i32_71 = arith.constant 0 : i32
    %135 = arith.cmpi sgt, %arg0, %c0_i32_71 : i32
    %136 = vector.broadcast %135 : i1 to vector<2x8xi1>
    %137 = arith.andi %4, %136 : vector<2x8xi1>
    %138 = vector.shape_cast %134 : vector<2x1xf32> to vector<2x1xf32>
    %139 = vector.broadcast %138 : vector<2x1xf32> to vector<2x8xf32>
    %140 = arith.select %137, %139, %131 : vector<2x8xi1>, vector<2x8xf32>
    %c0_72 = arith.constant 0 : index
    %c0_73 = arith.constant 0 : index
    %141 = vector.load %arg19[%c0_72, %c0_73] : memref<2x8xf32, #tpu.memory_space<vmem>>, vector<2x8xf32>
    tpu.vector_store %arg19[%c0_72, %c0_73], %140 {strides = array<i32>} : memref<2x8xf32, #tpu.memory_space<vmem>>, vector<2x8xf32>,
    %142 = vector.broadcast %129 : vector<2x1xf32> to vector<2x8xf32>
    %143 = arith.cmpf ogt, %0, %142 : vector<2x8xf32>
    %144 = arith.extui %143 : vector<2x8xi1> to vector<2x8xi32>
    %145 = arith.sitofp %144 : vector<2x8xi32> to vector<2x8xf32>
    %146 = arith.maximumf %140, %145 : vector<2x8xf32>
    %c0_74 = arith.constant 0 : index
    %c0_75 = arith.constant 0 : index
    %147 = vector.load %arg20[%c0_74, %c0_75] : memref<2x8xf32, #tpu.memory_space<vmem>>, vector<2x8xf32>
    tpu.vector_store %arg20[%c0_74, %c0_75], %146 {strides = array<i32>} : memref<2x8xf32, #tpu.memory_space<vmem>>, vector<2x8xf32>,
    %148 = vector.shape_cast %99 : vector<2x8xf32> to vector<2x8x1xf32>
    %c0_76 = arith.constant 0 : index
    %c0_77 = arith.constant 0 : index
    %c0_78 = arith.constant 0 : index
    %149 = vector.load %arg2[%c0_76, %c0_77, %c0_78] : memref<2x8x32xf32, #tpu.memory_space<vmem>>, vector<2x8x32xf32>
    %150 = vector.broadcast %148 : vector<2x8x1xf32> to vector<2x8x32xf32>
    %151 = arith.mulf %150, %149 : vector<2x8x32xf32>
    %cst_79 = arith.constant dense<0.000000e+00> : vector<2x32xf32>
    %152 = vector.multi_reduction <add>, %151, %cst_79 [1] : vector<2x8x32xf32> to vector<2x32xf32>
    %c0_80 = arith.constant 0 : index
    %c0_81 = arith.constant 0 : index
    %153 = vector.load %arg23[%c0_80, %c0_81] : memref<2x32xf32, #tpu.memory_space<vmem>>, vector<2x32xf32>
    tpu.vector_store %arg23[%c0_80, %c0_81], %152 {strides = array<i32>} : memref<2x32xf32, #tpu.memory_space<vmem>>, vector<2x32xf32>,
    return
  }
  func.func @transform_0(%arg0: i32, %arg1: memref<1xi32, #tpu.memory_space<smem>>) -> (i32, i32, i32) {
    %c0_i32 = arith.constant 0 : i32
    %c0_i32_0 = arith.constant 0 : i32
    %c0_i32_1 = arith.constant 0 : i32
    %c0_i32_2 = arith.constant 0 : i32
    return %c0_i32, %c0_i32_0, %c0_i32_1 : i32, i32, i32
  }
  func.func @transform_1(%arg0: i32, %arg1: memref<1xi32, #tpu.memory_space<smem>>) -> (i32, i32) {
    %c0_i32 = arith.constant 0 : i32
    %c0_i32_0 = arith.constant 0 : i32
    %c0_i32_1 = arith.constant 0 : i32
    return %c0_i32, %c0_i32_0 : i32, i32
  }
  func.func @transform_2(%arg0: i32, %arg1: memref<1xi32, #tpu.memory_space<smem>>) -> (i32, i32) {
    %c0_i32 = arith.constant 0 : i32
    %c0_i32_0 = arith.constant 0 : i32
    %c0_i32_1 = arith.constant 0 : i32
    return %c0_i32, %c0_i32_0 : i32, i32
  }
  func.func @transform_3(%arg0: i32, %arg1: memref<1xi32, #tpu.memory_space<smem>>) -> (i32, i32) {
    %c0_i32 = arith.constant 0 : i32
    %c0_i32_0 = arith.constant 0 : i32
    %c0_i32_1 = arith.constant 0 : i32
    return %c0_i32, %c0_i32_0 : i32, i32
  }
  func.func @transform_4(%arg0: i32, %arg1: memref<1xi32, #tpu.memory_space<smem>>) -> (i32, i32) {
    %c0_i32 = arith.constant 0 : i32
    %c0_i32_0 = arith.constant 0 : i32
    %c0_i32_1 = arith.constant 0 : i32
    return %c0_i32, %c0_i32_0 : i32, i32
  }
  func.func @transform_5(%arg0: i32, %arg1: memref<1xi32, #tpu.memory_space<smem>>) -> (i32, i32, i32) {
    %c0_i32 = arith.constant 0 : i32
    %c0_i32_0 = arith.constant 0 : i32
    %c0_i32_1 = arith.constant 0 : i32
    %c0_i32_2 = arith.constant 0 : i32
    return %c0_i32, %c0_i32_0, %c0_i32_1 : i32, i32, i32
  }
  func.func @transform_6(%arg0: i32, %arg1: memref<1xi32, #tpu.memory_space<smem>>) -> (i32, i32, i32) {
    %c0_i32 = arith.constant 0 : i32
    %c0_i32_0 = arith.constant 0 : i32
    %c0_i32_1 = arith.constant 0 : i32
    %c0_i32_2 = arith.constant 0 : i32
    return %c0_i32, %c0_i32_0, %c0_i32_1 : i32, i32, i32
  }
  func.func @transform_7(%arg0: i32, %arg1: memref<1xi32, #tpu.memory_space<smem>>) -> (i32, i32, i32) {
    %c0_i32 = arith.constant 0 : i32
    %c0_i32_0 = arith.constant 0 : i32
    %c0_i32_1 = arith.constant 0 : i32
    %c0_i32_2 = arith.constant 0 : i32
    return %c0_i32, %c0_i32_0, %c0_i32_1 : i32, i32, i32
  }
  func.func @transform_8(%arg0: i32, %arg1: memref<1xi32, #tpu.memory_space<smem>>) -> (i32, i32) {
    %c0_i32 = arith.constant 0 : i32
    %c0_i32_0 = arith.constant 0 : i32
    %c0_i32_1 = arith.constant 0 : i32
    return %c0_i32, %c0_i32_0 : i32, i32
  }
  func.func @transform_9(%arg0: i32, %arg1: memref<1xi32, #tpu.memory_space<smem>>) -> (i32, i32) {
    %c0_i32 = arith.constant 0 : i32
    %c0_i32_0 = arith.constant 0 : i32
    %c0_i32_1 = arith.constant 0 : i32
    return %c0_i32, %c0_i32_0 : i32, i32
  }
  func.func @transform_10(%arg0: i32, %arg1: memref<1xi32, #tpu.memory_space<smem>>) -> (i32, i32) {
    %c0_i32 = arith.constant 0 : i32
    %c0_i32_0 = arith.constant 0 : i32
    %c0_i32_1 = arith.constant 0 : i32
    return %c0_i32, %c0_i32_0 : i32, i32
  }
  func.func @transform_11(%arg0: i32, %arg1: memref<1xi32, #tpu.memory_space<smem>>) -> (i32, i32) {
    %c0_i32 = arith.constant 0 : i32
    %c0_i32_0 = arith.constant 0 : i32
    %c0_i32_1 = arith.constant 0 : i32
    return %c0_i32, %c0_i32_0 : i32, i32
  }
  func.func @transform_12(%arg0: i32, %arg1: memref<1xi32, #tpu.memory_space<smem>>) -> (i32, i32) {
    %c0_i32 = arith.constant 0 : i32
    %c0_i32_0 = arith.constant 0 : i32
    %c0_i32_1 = arith.constant 0 : i32
    return %c0_i32, %c0_i32_0 : i32, i32
  }
  func.func @transform_13(%arg0: i32, %arg1: memref<1xi32, #tpu.memory_space<smem>>) -> (i32, i32) {
    %c0_i32 = arith.constant 0 : i32
    %c0_i32_0 = arith.constant 0 : i32
    %c0_i32_1 = arith.constant 0 : i32
    return %c0_i32, %c0_i32_0 : i32, i32
  }
  func.func @transform_14(%arg0: i32, %arg1: memref<1xi32, #tpu.memory_space<smem>>) -> (i32, i32) {
    %c0_i32 = arith.constant 0 : i32
    %c0_i32_0 = arith.constant 0 : i32
    %c0_i32_1 = arith.constant 0 : i32
    return %c0_i32, %c0_i32_0 : i32, i32
  }
  func.func @transform_15(%arg0: i32, %arg1: memref<1xi32, #tpu.memory_space<smem>>) -> (i32, i32) {
    %c0_i32 = arith.constant 0 : i32
    %c0_i32_0 = arith.constant 0 : i32
    %c0_i32_1 = arith.constant 0 : i32
    return %c0_i32, %c0_i32_0 : i32, i32
  }
  func.func @transform_16(%arg0: i32, %arg1: memref<1xi32, #tpu.memory_space<smem>>) -> (i32, i32) {
    %c0_i32 = arith.constant 0 : i32
    %c0_i32_0 = arith.constant 0 : i32
    %c0_i32_1 = arith.constant 0 : i32
    return %c0_i32, %c0_i32_0 : i32, i32
  }
}

</mosaic_0001>

<bundles_post_ra>
// kernel: gat_decoder_forward.2
= control target key start
LH: loop header
LB: loop body
LE: loop exit
PB: predicated region body
PF: predicated region fallthrough
CT: control target
= control target key end

     0   :  { %vm17_vm0 = vcmask 261120   ;;  %vm99_vm1 = vcmask 785408   ;;  %s172_s1 = inlined_call_operand.vmem [shape: f32[32,96], index: 1, kind: input, shape index: {}]   ;;  %s173_s0 = inlined_call_operand.vmem [shape: f32[2,8,32], index: 0, kind: input, shape index: {}]   ;;  %s174_s2 = inlined_call_operand.vmem [shape: f32[2,8,96], index: 2, kind: output, shape index: {}]  }
   0x1   :  { %v13_v0 = vld [vmem:[%s172_s1] sm:$0xff]  ;;  %v14_v1 = vld [vmem:[%s172_s1 + $0x8] sm:$0xff]  ;;  %v15_v2 = vld [vmem:[%s172_s1 + $0x10] sm:$0xff] }
   0x2   :  { %v125_v3 = vpack.c.bf16 %v14_v1, %v13_v0  ;;  %v16_v4 = vld [vmem:[%s172_s1 + $0x18] sm:$0xff]  ;;  %v11_v5 = vld [vmem:[%s173_s0] sm:$0xff]  ;;  %v12_v7 = vld [vmem:[%s173_s0 + $0x8] sm:$0xff] }
   0x3   :  { %v129_v6 = vpack.c.bf16 %v16_v4, %v15_v2  ;;  %122 = vmatprep.mubr.msk.f32.mxu0 %vm17_vm0, %v11_v5 }
   0x4   :  { %126 = vmatprep.subr.bf16.mxu0 %v125_v3 }
   0x5   :  { %128 = vmatpush3.bf16.msra.mxu0 %v125_v3 }
   0x6   :  { %130 = vmatprep.subr.bf16.mxu0 %v129_v6 }
   0x9   :  { %132 = vmatpush3.bf16.msra.mxu0 %v129_v6 }
   0xc   :  { %123 = vmatmul.mubr.msk.f32.vlgmr.msra.gmra.mrb[0].mxu0 %vm17_vm0, %v12_v7 }
  0xdf   :  { %v124_v8 = vpop.f32.mrb[0].mxu0 }
  0xe0   :  { %101 = vst.msk [vmem:[%s174_s2 + $0x8] sm:$0xff] %vm99_vm1, %v124_v8  ;;  %v90_v9 = vpop.f32.mrb[1].mxu0 }
  0xe1   :  { %100 = vst.msk [vmem:[%s174_s2] sm:$0xff] %vm99_vm1, %v90_v9 }

// kernel: gat_decoder_forward.3
= control target key start
LH: loop header
LB: loop body
LE: loop exit
PB: predicated region body
PF: predicated region fallthrough
CT: control target
= control target key end

     0   :  { %s1745_s24 = smov 0   ;;  %s2011_s0 = inlined_call_operand.<no memory space> [shape: s32[1], index: 0, kind: input, shape index: {}]   ;;  %s2012_s1 = inlined_call_operand.vmem [shape: f32[2,8,32], index: 1, kind: input, shape index: {}]   ;;  %s2013_s2 = inlined_call_operand.vmem [shape: f32[2,32], index: 2, kind: input, shape index: {}]   ;;  %s2014_s3 = inlined_call_operand.vmem [shape: f32[2,32], index: 3, kind: input, shape index: {}]   ;;  %s2015_s4 = inlined_call_operand.vmem [shape: f32[2,8], index: 4, kind: input, shape index: {}]   ;;  %s2016_s5 = inlined_call_operand.vmem [shape: f32[2,1], index: 5, kind: input, shape index: {}]   ;;  %s2017_s6 = inlined_call_operand.vmem [shape: f32[2,8,32], index: 6, kind: input, shape index: {}]   ;;  %s2018_s7 = inlined_call_operand.vmem [shape: f32[2,8,32], index: 7, kind: input, shape index: {}]   ;;  %s2019_s8 = inlined_call_operand.vmem [shape: f32[2,8,32], index: 8, kind: input, shape index: {}]   ;;  %s2020_s9 = inlined_call_operand.vmem [shape: f32[32,8], index: 9, kind: input, shape index: {}]   ;;  %s2021_s10 = inlined_call_operand.vmem [shape: f32[8,32], index: 10, kind: input, shape index: {}]   ;;  %s2022_s11 = inlined_call_operand.vmem [shape: f32[32,32], index: 11, kind: input, shape index: {}]   ;;  %s2023_s12 = inlined_call_operand.vmem [shape: f32[1,32], index: 12, kind: input, shape index: {}]   ;;  %s2024_s13 = inlined_call_operand.vmem [shape: f32[32,32], index: 13, kind: input, shape index: {}]   ;;  %s2025_s14 = inlined_call_operand.vmem [shape: f32[32,32], index: 14, kind: input, shape index: {}]   ;;  %s2026_s15 = inlined_call_operand.vmem [shape: f32[32,32], index: 15, kind: input, shape index: {}]   ;;  %s2027_s16 = inlined_call_operand.vmem [shape: s32[6,2], index: 16, kind: output, shape index: {0}]   ;;  %s2028_s17 = inlined_call_operand.vmem [shape: f32[6,2], index: 17, kind: output, shape index: {1}]  }
   0x1   :  { %2030 = sst [smem:[#allocation9_spill]] %s2012_s1 }
   0x2 LB: > { %s1751_s25 = sadd.s32 4294967295, %s1646_s24   ;;  %p1461_p0 = scmp.ge.s32.totalorder %s1646_s24, 1  ;;  %s1646_s24 = sphi %s1745_s24, %s29_s24  }
   0x3   : > { %p447_p1 = scmp.lt.s32.totalorder %s1646_s24, 7 }
   0x5   : > { %p448_p2 = pnand %p1461_p0, %p447_p1 }
   0x6   : > { %v1758_v0 = vld [vmem:[%s2015_s4] sm:$0x3] (!%p448_p2)  ;;  %v489_v2 = vlaneseq (!%p448_p2)  ;;  %p1462_p3 = scmp.ne.s32.totalorder (!%p448_p2), %s1751_s25, 0 }
   0x7   : > { %451 = sbr.rel (%p448_p2) target bundleno = 2467 (0x9a3), region = 80  ;;  %v1763_v1 = vld [vmem:[%s2016_s5] sm:$0x3] (!%p448_p2) }
   0x8   : > { %v1766_v3 = vand.u32 (!%p448_p2), 127, %v489_v2 }
   0xa   : > { %vm491_vm0 = vcmp.eq.s32.totalorder (!%p448_p2), %v1766_v3, 0 }
   0xe   : > { %495 = sbr.rel (%p1462_p3) target bundleno = 149 (0x95), region = 84  ;;  %v1648_v4 = vmov (!%p1462_p3), 0   ;;  %vm505_vm1 = vcmask (!%p1462_p3), 58368   ;;  %v1649_v5 = vmov (!%p1462_p3), 0.0   ;;  %v496_v7 = vld [vmem:[%s2014_s3] sm:$0x3] (!%p1462_p3) }
   0xf   : > { %1617 = vset.pattern.permute.xlu0 (!%p1462_p3), %v1648_v4  ;;  %v1463_v6 = vsel (!%p1462_p3), %vm491_vm0, 1.0, %v1649_v5  ;;  %vm497_vm2 = vcmask (!%p1462_p3), 254976   ;;  %vm499_vm3 = vcmask (!%p1462_p3), 1024   ;;  %v501_v8 = vld [vmem:[%s2013_s2] sm:$0x3] (!%p1462_p3) }
  0x10   : > { %509 = vperm.xlu0 (!%p1462_p3), %1617, %v1763_v1   ;;  %506 = vst.msk [vmem:[#allocation2] sm:$0x3] (!%p1462_p3), %vm505_vm1, %v1463_v6 }
  0x11   : > { %498 = vst.msk [vmem:[#allocation5] sm:$0x3] (!%p1462_p3), %vm497_vm2, %v496_v7  ;;  %502 = vst.msk [vmem:[#allocation6] sm:$0x3] (!%p1462_p3), %vm497_vm2, %v501_v8 }
  0x12   : > { %500 = vst.msk [vmem:[#allocation4] sm:$0x3] (!%p1462_p3), %vm499_vm3, %v1763_v1 }
  0x8f   : > { %v510_v9 = vpop.permute.xlu0 %509 }
  0x90   : > { %vm512_vm4 = vcmp.gt.f32.partialorder %v1758_v0, %v510_v9 }
  0x91   : > { %v1464_v10 = vsel %vm512_vm4, 1.0, %v1649_v5 }
  0x92   : > { %v515_v11 = vmax.f32 %v1463_v6, %v1464_v10 }
  0x94   : > { %516 = vst.msk [vmem:[#allocation3] sm:$0x3] %vm505_vm1, %v515_v11 }
  0x95 PF: > { %v600_v12 = vld [vmem:[%s2022_s11] sm:$0xff]  ;;  %v601_v13 = vld [vmem:[%s2022_s11 + $0x8] sm:$0xff]  ;;  %v1650_v15 = vmov 0.0|0.0   ;;  %v602_v18 = vld [vmem:[%s2022_s11 + $0x10] sm:$0xff]  ;;  %vm1651_vm5 = vmmov 0   ;;  %v1652_v23 = vmov 0.0   ;;  %s1358_s28 = scalar_lea.vmem %s2027_s16, %s1751_s25  ;;  %s1367_s21 = scalar_lea.vmem %s2028_s17, %s1751_s25 }
  0x96   : > { %v522_v14 = vld [vmem:[%s2024_s13] sm:$0xff]  ;;  %1576 = vmatprep.subr.bf16.mxu1 %v1650_v15  ;;  %1570 = vmatprep.subr.bf16.mxu0 %v1650_v15  ;;  %v1577_v16 = vpack.c.bf16 %v601_v13, %v600_v12  ;;  %v523_v17 = vld [vmem:[%s2024_s13 + $0x8] sm:$0xff]  ;;  %v603_v19 = vld [vmem:[%s2022_s11 + $0x18] sm:$0xff]  ;;  %v1653_v25 = vmov 0   ;;  %vm526_vm6 = vcmask 261120   ;;  %vm693_vm7 = vcmask 58368  }
  0x97   : > { %v1571_v20 = vpack.c.bf16 %v523_v17, %v522_v14  ;;  %v524_v21 = vld [vmem:[%s2024_s13 + $0x10] sm:$0xff]  ;;  %v525_v22 = vld [vmem:[%s2024_s13 + $0x18] sm:$0xff]  ;;  %1529 = vmatprep.mubr.msk.f32.mxu1 %vm1651_vm5, %v1652_v23  ;;  %1518 = vmatprep.mubr.msk.f32.mxu0 %vm1651_vm5, %v1652_v23  ;;  %v1580_v24 = vpack.c.bf16 %v603_v19, %v602_v18  ;;  %v702_v28 = vld [vmem:[%s2025_s14] sm:$0xff]  ;;  %vm691_vm8 = vcmask 254976   ;;  %v1856_v53 = vshrl.u32 %v489_v2, 7  ;;  %p1381_p4 = scmp.gt.s32.totalorder %s1751_s25, 0 }
  0x98   : > { %1578 = vmatpush3.bf16.msra.mxu1 %v1577_v16  ;;  %1618 = vset.pattern.permute.xlu0 %v1653_v25  ;;  %v1574_v27 = vpack.c.bf16 %v525_v22, %v524_v21  ;;  %v703_v29 = vld [vmem:[%s2025_s14 + $0x8] sm:$0xff]  ;;  %v520_v31 = vld [vmem:[#allocation5] sm:$0x3]  ;;  %v704_v33 = vld [vmem:[%s2025_s14 + $0x10] sm:$0xff]  ;;  %v1654_v60 = vmov 1966171168  }
  0x99   : > { %v1813_v26 = vld [vmem:[#allocation4] sm:$0x3]  ;;  %1572 = vmatpush3.bf16.msra.mxu0 %v1571_v20  ;;  %1579 = vmatprep.subr.bf16.mxu1 %v1650_v15  ;;  %v521_v30 = vld [vmem:[#allocation6] sm:$0x3]  ;;  %v1583_v32 = vpack.c.bf16 %v703_v29, %v702_v28  ;;  %v705_v34 = vld [vmem:[%s2025_s14 + $0x18] sm:$0xff]  ;;  %v1859_v55 = vsub.s32 0, %v1856_v53  ;;  %v785_v61 = vunpack.c.l.s4 %v1654_v60 }
  0x9a   : > { %1573 = vmatprep.subr.bf16.mxu0 %v1650_v15  ;;  %607 = vperm.xlu0 %1618, %v1813_v26   ;;  %v1586_v35 = vpack.c.bf16 %v705_v34, %v704_v33  ;;  %v1466_v38 = vld [vmem:[%s2023_s12] ss:$0 sm:$0xff]  ;;  %v819_v48 = vld [vmem:[%s2020_s9 + $0x8] sm:$0xff]  ;;  %v820_v50 = vld [vmem:[%s2020_s9 + $0x10] sm:$0xff]  ;;  %v1864_v56 = vsub.s32 1, %v1856_v53  ;;  %vm921_vm11 = vcmask 64512  }
  0x9b   : > { %1619 = vset.pattern.permute.xlu1 %v1653_v25  ;;  %v518_v36 = vld [vmem:[#allocation3] sm:$0x3]  ;;  %v821_v51 = vld [vmem:[%s2020_s9 + $0x18] sm:$0xff]  ;;  %v786_v62 = vunpack.c.0.s8 %v785_v61  ;;  %v780_v11 = vld [vmem:[%s2017_s6 + $0x8] sm:$0xff]  ;;  %vm1064_vm12 = vcmask 1041409   ;;  %vm1359_vm2 = vcmask 8192  }
  0x9c   : > { %1581 = vmatpush3.bf16.msra.mxu1 %v1580_v24  ;;  %v694_v37 = vsel %vm693_vm7, %v518_v36, 0.0  ;;  %v818_v47 = vld [vmem:[%s2020_s9] sm:$0xff]  ;;  %v1592_v52 = vpack.c.bf16 %v821_v51, %v820_v50  ;;  %s1382_s23 = scalar_select %p1381_p4, 1, 0 }
  0x9d   : > { %1575 = vmatpush3.bf16.msra.mxu0 %v1574_v27  ;;  %v1588_v49 = vpack.c.bf16 %v819_v48, %v818_v47  ;;  %v1873_v63 = vsub.s32 %v786_v62, %v1856_v53  ;;  %v779_v8 = vld [vmem:[%s2017_s6] sm:$0xff]  ;;  %s2031_s0 = sld [smem:[#allocation9_spill]] }
  0x9e   : > { %1582 = vmatprep.subr.bf16.mxu0 %v1650_v15  ;;  %v960_v16 = vld [vmem:[%s2021_s10] sm:$0xff] }
  0x9f   : > { %1530 = vmatmul.mubr.msk.f32.vlgmr.msra.gmra.mrb[0].mxu1 %vm526_vm6, %v521_v30  ;;  %1589 = vmatprep.subr.bf16.mxu1 %v1588_v49 }
  0xa0   : > { %1519 = vmatmul.mubr.msk.f32.vlgmr.msra.gmra.mrb[0].mxu0 %vm526_vm6, %v520_v31  ;;  %1591 = vmatpush3.bf16.msra.mxu1 %v1588_v49 }
  0xa1   : > { %1584 = vmatpush3.bf16.msra.mxu0 %v1583_v32  ;;  %1540 = vmatprep.mubr.msk.f32.mxu0 %vm1651_vm5, %v1652_v23 }
  0xa2   : > { %1585 = vmatprep.subr.bf16.mxu0 %v1650_v15  ;;  %1593 = vmatprep.subr.bf16.mxu1 %v1592_v52 }
  0xa4   : > { %1595 = vmatpush3.bf16.msra.mxu1 %v1592_v52 }
  0xa5   : > { %1587 = vmatpush3.bf16.msra.mxu0 %v1586_v35  ;;  %1596 = vmatprep.subr.bf16.mxu1 %v1650_v15 }
  0xa6   : > { %1554 = vmatprep.subr.mxu0 %v960_v16 }
  0xb9   : > { %695 = vadd.xlane.f32.xlu0 %v694_v37 }
 0x119   : > { %v608_v39 = vpop.permute.xlu0 %607 }
 0x11a   : > { %v616_v40 = vmul.f32 %v1466_v38, %v608_v39 }
 0x146   : > { %v696_v54 = vpop.xlane.xlu0 %695 }
 0x147   : > { %vm697_vm9 = vcmp.ge.f32.partialorder %v696_v54, 7.5 }
 0x148   : > { %vm700_vm10 = vmand %vm697_vm9, %vm491_vm0 }
 0x149   : > { %v1866_v57 = vsel %vm700_vm10, 0.0, %v518_v36 }
 0x14a   : > { %v906_v58 = vrot.slane %v1866_v57, %v1859_v55  ;;  %v913_v59 = vrot.slane %v1866_v57, %v1864_v56 }
 0x14c   : > { %908 = vbcast.lane.b32.xlu1 %v906_v58, 256 }
 0x150   : > { %915 = vbcast.lane.b32.xlu1 %v913_v59, 256 }
 0x172   : > { %v686_v41 = vpop.f32.mrb[0].mxu1 }
 0x173   : > { %v687_v42 = vadd.f32 %v686_v41, %v616_v40  ;;  %v596_v43 = vpop.f32.mrb[0].mxu0  ;;  %v1531_v44 = vpop.f32.mrb[1].mxu1 }
 0x174   : > { %692 = vst.msk [vmem:[#allocation5] sm:$0x3] %vm691_vm8, %v596_v43  ;;  %v1520_v45 = vpop.f32.mrb[1].mxu0 }
 0x175   : > { %v690_v46 = vadd.f32 %v687_v42, %v596_v43 }
 0x177   : > { %1541 = vmatmul.mubr.msk.f32.vlgmr.msra.gmra.mrb[2].mxu0 %vm526_vm6, %v690_v46 }
 0x178   : > { %1555 = vmatpush3.msra.mxu0 %v960_v16  ;;  %v782_v16 = vld [vmem:[%s2018_s7 + $0x8] sm:$0xff] }
 0x1be   : > { %v909_v17 = vpop.permute.xlu1 %908 }
 0x1bf   : > { %v917_v20 = vmul.f32 1e+30, %v909_v17  ;;  %v781_v17 = vld [vmem:[%s2018_s7] sm:$0xff] }
 0x1c2   : > { %v916_v18 = vpop.permute.xlu1 %915 }
 0x1c3   : > { %v918_v19 = vmul.f32 1e+30, %v916_v18 }
 0x24a   : > { %v775_v2 = vpop.f32.mrb[2].mxu0 }
 0x24b   : > { %v790_v4 = vrot.slane %v775_v2, %v1873_v63  ;;  %v1542_v5 = vpop.f32.mrb[3].mxu0 }
 0x24d   : > { %v791_v6 = vcombine.high %v790_v4, %v790_v4  ;;  %v798_v7 = vrot.slane %v790_v4, %v1873_v63 }
 0x24f   : > { %v805_v9 = vrot.slane %v791_v6, %v1873_v63  ;;  %v809_v10 = vrot.slane %v798_v7, %v1859_v55 }
 0x251   : > { %v813_v12 = vrot.slane %v805_v9, %v1859_v55  ;;  %v816_v13 = vmul.f32 %v809_v10, %v779_v8  ;;  %v1058_v9 = vld [vmem:[%s2026_s15] sm:$0xff]  ;;  %v1059_v10 = vld [vmem:[%s2026_s15 + $0x8] sm:$0xff] }
 0x253   : > { %v817_v14 = vmul.f32 %v813_v12, %v780_v11  ;;  %1551 = vmatprep.mubr.msk.f32.mxu1 %vm526_vm6, %v816_v13  ;;  %v1597_v11 = vpack.c.bf16 %v1059_v10, %v1058_v9  ;;  %v1060_v12 = vld [vmem:[%s2026_s15 + $0x10] sm:$0xff]  ;;  %v1061_v13 = vld [vmem:[%s2026_s15 + $0x18] sm:$0xff] }
 0x255   : > { %1552 = vmatmul.mubr.msk.f32.vlgmr.msra.gmra.mrb[2].mxu1 %vm526_vm6, %v817_v14  ;;  %v1600_v14 = vpack.c.bf16 %v1061_v13, %v1060_v12 }
 0x256   : > { %1567 = vmatprep.mubr.msk.f32.mxu1 %vm1651_vm5, %v1652_v23  ;;  %1598 = vmatpush3.bf16.msra.mxu1 %v1597_v11 }
 0x257   : > { %1599 = vmatprep.subr.bf16.mxu1 %v1650_v15 }
 0x25a   : > { %1601 = vmatpush3.bf16.msra.mxu1 %v1600_v14 }
 0x328   : > { %v1553_v21 = vpop.f32.mrb[2].mxu1 }
 0x329   : > { %v920_v22 = vsub.f32 %v1553_v21, %v918_v19  ;;  %v894_v24 = vpop.f32.mrb[3].mxu1 }
 0x32a   : > { %v919_v25 = vsub.f32 %v894_v24, %v917_v20 }
 0x32b   : > { %v929_v27 = vsel %vm921_vm11, %v920_v22, -inf }
 0x32c   : > { %v930_v28 = vrot.slane %v929_v27, 4  ;;  %v922_v29 = vsel %vm921_vm11, %v919_v25, -inf }
 0x32d   : > { %v923_v30 = vrot.slane %v922_v29, 4 }
 0x32e   : > { %v931_v31 = vmax.f32 %v929_v27, %v930_v28 }
 0x32f   : > { %v924_v32 = vmax.f32 %v922_v29, %v923_v30 }
 0x330   : > { %v932_v33 = vrot.slane %v931_v31, 2 }
 0x331   : > { %v925_v34 = vrot.slane %v924_v32, 2 }
 0x332   : > { %v933_v35 = vmax.f32 %v931_v31, %v932_v33 }
 0x333   : > { %v926_v36 = vmax.f32 %v924_v32, %v925_v34 }
 0x334   : > { %v934_v37 = vrot.slane %v933_v35, 1 }
 0x335   : > { %v927_v38 = vrot.slane %v926_v36, 1 }
 0x336   : > { %v935_v39 = vmax.f32 %v933_v35, %v934_v37 }
 0x337   : > { %v928_v40 = vmax.f32 %v926_v36, %v927_v38 }
 0x338   : > { %v937_v41 = vsub.f32 %v920_v22, %v935_v39 }
 0x339   : > { %v936_v42 = vsub.f32 %v919_v25, %v928_v40 }
 0x33a   : > { %v940_v43 = vmul.f32 1.442695, %v937_v41 }
 0x33b   : > { %v938_v44 = vmul.f32 1.442695, %v936_v42 }
 0x33c   : > { %1620 = vpow2.f32 %v940_v43  ;;  %v1161_v43 = vld [vmem:[%s2019_s8] sm:$0xff] }
 0x33d   : > { %1622 = vpow2.f32 %v938_v44 }
 0x346   : > { %v1621_v45 = vpop.eup %1620 }
 0x347   : > { %v1623_v46 = vpop.eup %1622  ;;  %v949_v47 = vsel %vm921_vm11, %v1621_v45, 0.0 }
 0x348   : > { %v950_v48 = vrot.slane %v949_v47, 4  ;;  %v942_v49 = vsel %vm921_vm11, %v1623_v46, 0.0 }
 0x349   : > { %v943_v50 = vrot.slane %v942_v49, 4 }
 0x34a   : > { %v951_v51 = vadd.f32 %v950_v48, %v949_v47 }
 0x34b   : > { %v944_v52 = vadd.f32 %v943_v50, %v942_v49 }
 0x34c   : > { %v952_v54 = vrot.slane %v951_v51, 2 }
 0x34d   : > { %v945_v58 = vrot.slane %v944_v52, 2 }
 0x34e   : > { %v953_v59 = vadd.f32 %v952_v54, %v951_v51 }
 0x34f   : > { %v946_v60 = vadd.f32 %v945_v58, %v944_v52  ;;  %v1185_v52 = vmul.f32 1e+30, %v1866_v57  ;;  %v1941_v57 = vsub.s32 %v1766_v3, %v1856_v53 }
 0x350   : > { %v954_v61 = vrot.slane %v953_v59, 1 }
 0x351   : > { %v947_v62 = vrot.slane %v946_v60, 1  ;;  %v1190_v54 = vrot.slane %v1185_v52, %v1859_v55 }
 0x352   : > { %v955_v2 = vadd.f32 %v954_v61, %v953_v59 }
 0x353   : > { %v948_v4 = vadd.f32 %v947_v62, %v946_v60 }
 0x354   : > { %1624 = vrcp.f32 %v955_v2 }
 0x355   : > { %1626 = vrcp.f32 %v948_v4 }
 0x35e   : > { %v1625_v5 = vpop.eup %1624 }
 0x35f   : > { %v1627_v6 = vpop.eup %1626  ;;  %v959_v8 = vmul.f32 %v1625_v5, %v1621_v45 }
 0x360   : > { %v958_v7 = vmul.f32 %v1627_v6, %v1623_v46  ;;  %v1162_v46 = vld [vmem:[%s2019_s8 + $0x8] sm:$0xff] }
 0x362   : > { %1556 = vmatprep.mubr.msk.f32.mxu0 %vm921_vm11, %v958_v7 }
 0x363   : > { %1557 = vmatmul.mubr.msk.f32.vlgmr.msra.gmra.mrb[4].mxu0 %vm921_vm11, %v959_v8 }
 0x436   : > { %v1558_v18 = vpop.f32.mrb[4].mxu0 }
 0x437   : > { %v1043_v15 = vmul.f32 %v1558_v18, %v782_v16  ;;  %v1033_v19 = vpop.f32.mrb[5].mxu0 }
 0x438   : > { %v1042_v20 = vmul.f32 %v1033_v19, %v781_v17 }
 0x439   : > { %v1051_v21 = vsel %vm526_vm6, %v1043_v15, 0.0 }
 0x43a   : > { %v1052_v22 = vrot.slane %v1051_v21, 4  ;;  %v1044_v24 = vsel %vm526_vm6, %v1042_v20, 0.0 }
 0x43b   : > { %v1045_v25 = vrot.slane %v1044_v24, 4 }
 0x43c   : > { %v1053_v27 = vadd.f32 %v1052_v22, %v1051_v21 }
 0x43d   : > { %v1046_v28 = vadd.f32 %v1045_v25, %v1044_v24 }
 0x43e   : > { %v1054_v29 = vrot.slane %v1053_v27, 2 }
 0x43f   : > { %v1047_v30 = vrot.slane %v1046_v28, 2 }
 0x440   : > { %v1055_v31 = vadd.f32 %v1054_v29, %v1053_v27 }
 0x441   : > { %v1048_v32 = vadd.f32 %v1047_v30, %v1046_v28 }
 0x442   : > { %v1056_v33 = vrot.slane %v1055_v31, 1 }
 0x443   : > { %v1049_v34 = vrot.slane %v1048_v32, 1 }
 0x444   : > { %v1057_v35 = vadd.f32 %v1056_v33, %v1055_v31 }
 0x445   : > { %v1050_v36 = vadd.f32 %v1049_v34, %v1048_v32 }
 0x447   : > { %v1065_v37 = vsel %vm1064_vm12, %v1057_v35, %v1050_v36 }
 0x448   : > { %1568 = vmatmul.mubr.msk.f32.vlgmr.msra.gmra.mrb[4].mxu1 %vm526_vm6, %v1065_v37 }
 0x51b   : > { %v1134_v38 = vpop.f32.mrb[4].mxu1 }
 0x51c   : > { %v1145_v39 = vrot.slane %v1134_v38, %v1873_v63  ;;  %v1569_v40 = vpop.f32.mrb[5].mxu1 }
 0x51e   : > { %v1146_v41 = vcombine.high %v1145_v39, %v1145_v39  ;;  %v1153_v42 = vrot.slane %v1145_v39, %v1873_v63 }
 0x520   : > { %v1160_v44 = vrot.slane %v1146_v41, %v1873_v63  ;;  %v1166_v45 = vrot.slane %v1153_v42, %v1859_v55  ;;  %v1197_v63 = vrot.slane %v1185_v52, %v1864_v56 }
 0x522   : > { %v1173_v47 = vmul.f32 %v1166_v45, %v1161_v43  ;;  %v1170_v48 = vrot.slane %v1160_v44, %v1859_v55 }
 0x524   : > { %v1175_v49 = vsel %vm526_vm6, %v1173_v47, 0.0  ;;  %v1174_v50 = vmul.f32 %v1170_v48, %v1162_v46 }
 0x525   : > { %1176 = vadd.xlane.f32.xlu1 %v1175_v49 }
 0x526   : > { %v1178_v51 = vsel %vm526_vm6, %v1174_v50, 0.0 }
 0x527   : > { %1179 = vadd.xlane.f32.xlu0 %v1178_v51 }
 0x536   : > { %1199 = vbcast.lane.b32.xlu1 %v1197_v63, 256  ;;  %v1475_v63 = vsel %vm491_vm0, 1.0, %v1652_v23 }
 0x53d   : > { %1192 = vbcast.lane.b32.xlu0 %v1190_v54, 256  ;;  %v1383_v54 = vstv %s1382_s23 }
 0x53e   : > { %vm1384_vm1 = vcmp.eq.s32.totalorder %v1383_v54, 1 }
 0x53f   : > { %vm1385_vm5 = vmand %vm491_vm0, %vm1384_vm1  ;;  %vm1376_vm0 = vcmask 1024  }
 0x5b2   : > { %v1177_v58 = vpop.xlane.xlu1 %1176 }
 0x5b3   : > { %1628 = vtanh.f32 %v1177_v58 }
 0x5b4   : > { %v1180_v59 = vpop.xlane.xlu0 %1179 }
 0x5b5   : > { %1630 = vtanh.f32 %v1180_v59 }
 0x5b6   : > { %v1200_v6 = vpop.permute.xlu1 %1199 }
 0x5b8   : > { %v1193_v2 = vpop.permute.xlu0 %1192 }
 0x5bd   : > { %v1629_v60 = vpop.eup %1628 }
 0x5be   : > { %v1183_v61 = vmul.f32 10.0, %v1629_v60 }
 0x5bf   : > { %v1631_v62 = vpop.eup %1630 }
 0x5c0   : > { %v1184_v4 = vmul.f32 10.0, %v1631_v62  ;;  %v1203_v5 = vsub.f32 %v1183_v61, %v1193_v2  ;;  %v1342_v61 = vsub.f32 1.0, %v1475_v63  ;;  %v517_v62 = vld [vmem:[#allocation2] sm:$0x3] }
 0x5c2   : > { %v1204_v7 = vsub.f32 %v1184_v4, %v1200_v6  ;;  %1208 = vperm.xlu0 %1618, %v1203_v5   ;;  %v1343_v6 = vmul.f32 %v1342_v61, %v517_v62 }
 0x5c4   : > { %1211 = vperm.xlu1 %1619, %v1204_v7  }
 0x5c8   : > { %1281 = vbcast.lane.b32.xlu1 %v1766_v3, 256 }
 0x641   : > { %v1209_v8 = vpop.permute.xlu0 %1208 }
 0x642   : > { %v1216_v10 = vrot.slane %v1209_v8, %v1941_v57 }
 0x643   : > { %v1212_v9 = vpop.permute.xlu1 %1211 }
 0x644   : > { %v1220_v11 = vrot.slane %v1212_v9, %v1941_v57 }
 0x646   : > { %v1221_v12 = vsel %vm1064_vm12, %v1220_v11, %v1216_v10 }
 0x647   : > { %v1223_v13 = vsel %vm693_vm7, %v1221_v12, -inf  ;;  %v1282_v18 = vpop.permute.xlu1 %1281 }
 0x648   : > { %1224 = vmax.xlane.f32.xlu0 %v1223_v13 }
 0x6d5   : > { %v1225_v14 = vpop.xlane.xlu0 %1224 }
 0x6d6   : > { %v1230_v16 = vrot.slane %v1225_v14, %v1859_v55  ;;  %v1234_v17 = vrot.slane %v1225_v14, %v1864_v56 }
 0x6d8   : > { %v1237_v15 = vsub.f32 %v1203_v5, %v1230_v16  ;;  %v1238_v53 = vsub.f32 %v1204_v7, %v1234_v17  ;;  %vm1278_vm13 = vcmp.ge.f32.partialorder %v1203_v5, %v1230_v16  ;;  %vm1279_vm14 = vcmp.ge.f32.partialorder %v1204_v7, %v1234_v17 }
 0x6d9   : > { %v1283_v19 = vsel %vm1278_vm13, %v1282_v18, 8  ;;  %v1284_v22 = vsel %vm1279_vm14, %v1282_v18, 8 }
 0x6da   : > { %v1239_v20 = vmul.f32 1.442695, %v1237_v15  ;;  %1286 = vperm.xlu1 %1619, %v1283_v19   ;;  %v1241_v21 = vmul.f32 1.442695, %v1238_v53 }
 0x6dc   : > { %1632 = vpow2.f32 %v1239_v20 }
 0x6dd   : > { %1634 = vpow2.f32 %v1241_v21 }
 0x6de   : > { %1289 = vperm.xlu1 %1619, %v1284_v22  }
 0x6e6   : > { %v1633_v24 = vpop.eup %1632 }
 0x6e7   : > { %1246 = vperm.xlu1 %1619, %v1633_v24   ;;  %v1635_v25 = vpop.eup %1634 }
 0x6eb   : > { %1249 = vperm.xlu1 %1619, %v1635_v25  }
 0x759   : > { %v1287_v27 = vpop.permute.xlu1 %1286 }
 0x75a   : > { %v1294_v29 = vrot.slane %v1287_v27, %v1941_v57 }
 0x75d   : > { %v1290_v28 = vpop.permute.xlu1 %1289 }
 0x75e   : > { %v1298_v30 = vrot.slane %v1290_v28, %v1941_v57 }
 0x760   : > { %v1299_v31 = vsel %vm1064_vm12, %v1298_v30, %v1294_v29 }
 0x761   : > { %v1300_v32 = vsel %vm693_vm7, %v1299_v31, 2147483647 }
 0x762   : > { %v1302_v33 = vshra.s32 %v1300_v32, 16  ;;  %v1301_v41 = vand.u32 65535, %v1300_v32 }
 0x764   : > { %v1304_v34 = vcvt.s32.f32 %v1302_v33  ;;  %v1303_v43 = vcvt.s32.f32 %v1301_v41 }
 0x766   : > { %1305 = vmin.xlane.f32.xlu1 %v1304_v34  ;;  %v1247_v35 = vpop.permute.xlu1 %1246 }
 0x767   : > { %v1254_v37 = vrot.slane %v1247_v35, %v1941_v57 }
 0x76a   : > { %v1250_v36 = vpop.permute.xlu1 %1249 }
 0x76b   : > { %v1258_v38 = vrot.slane %v1250_v36, %v1941_v57 }
 0x76d   : > { %v1259_v39 = vsel %vm1064_vm12, %v1258_v38, %v1254_v37 }
 0x76e   : > { %v1261_v40 = vsel %vm693_vm7, %v1259_v39, 0.0 }
 0x76f   : > { %1262 = vadd.xlane.f32.xlu0 %v1261_v40 }
 0x7f3   : > { %v1306_v42 = vpop.xlane.xlu1 %1305 }
 0x7f4   : > { %vm1307_vm15 = vcmp.eq.f32.partialorder %v1304_v34, %v1306_v42  ;;  %v1312_v51 = vcvt.f32.s32 %v1306_v42 }
 0x7f5   : > { %v1308_v44 = vsel %vm1307_vm15, %v1303_v43, inf }
 0x7f6   : > { %1309 = vmin.xlane.f32.xlu0 %v1308_v44  ;;  %v1313_v58 = vshll.u32 %v1312_v51, 16 }
 0x7fc   : > { %v1263_v45 = vpop.xlane.xlu0 %1262 }
 0x7fd   : > { %1636 = vrcp.f32 %v1263_v45 }
 0x807   : > { %v1637_v46 = vpop.eup %1636 }
 0x808   : > { %v1273_v47 = vrot.slane %v1637_v46, %v1864_v56  ;;  %v1269_v48 = vrot.slane %v1637_v46, %v1859_v55 }
 0x80a   : > { %v1277_v49 = vmul.f32 %v1635_v25, %v1273_v47  ;;  %v1276_v50 = vmul.f32 %v1633_v24, %v1269_v48 }
 0x80c   : > { %1324 = vperm.xlu1 %1619, %v1277_v49   ;;  %1321 = vperm.xlu0 %1618, %v1276_v50  }
 0x883   : > { %v1310_v52 = vpop.xlane.xlu0 %1309 }
 0x884   : > { %v1311_v59 = vcvt.f32.s32 %v1310_v52 }
 0x886   : > { %v1314_v60 = vadd.s32 %v1313_v58, %v1311_v59 }
 0x888   : > { %vm1315_vm3 = vcmp.eq.s32.totalorder %v1766_v3, %v1314_v60  ;;  %v1357_v2 = vrot.slane %v1314_v60, %v1941_v57  ;;  %vm1369_vm4 = vcmp.eq.s32.totalorder %v1314_v60, 0  ;;  %v1344_v3 = vsel %vm693_vm7, %v1343_v6, 0.0 }
 0x889   : > { %v1474_v4 = vsel %vm1315_vm3, 1.0, %v1652_v23  ;;  %v1477_v10 = vsel %vm1369_vm4, 1.0, %v1652_v23 }
 0x88a   : > { %1360 = vst.msk [vmem:[%s1358_s28] sm:$0x1] %vm1359_vm2, %v1357_v2  ;;  %v1370_v5 = vmul.f32 %v1474_v4, %v1758_v0  ;;  %v1378_v7 = vmax.f32 %v517_v62, %v1474_v4  ;;  %v1408_v15 = vrot.slane %v1474_v4, %v1864_v56  ;;  %v1401_v53 = vrot.slane %v1474_v4, %v1859_v55  ;;  %v1412_v56 = vld [vmem:[%s2031_s0] sm:$0xff]  ;;  %v1413_v55 = vld [vmem:[%s2031_s0 + $0x8] sm:$0xff] }
 0x88b   : > { %v1322_v8 = vpop.permute.xlu0 %1321  ;;  %v1325_v9 = vpop.permute.xlu1 %1324 }
 0x88c   : > { %v1329_v11 = vrot.slane %v1322_v8, %v1941_v57  ;;  %v1333_v12 = vrot.slane %v1325_v9, %v1941_v57  ;;  %v1371_v13 = vsel %vm693_vm7, %v1370_v5, 0.0  ;;  %v1386_v14 = vsel %vm1385_vm5, %v1477_v10, %v1378_v7 }
 0x88d   : > { %1372 = vadd.xlane.f32.xlu0 %v1371_v13  ;;  %1387 = vst.msk [vmem:[#allocation2] sm:$0x3] %vm693_vm7, %v1386_v14 }
 0x88e   : > { %v1334_v16 = vsel %vm1064_vm12, %v1333_v12, %v1329_v11 }
 0x88f   : > { %v1336_v17 = vmul.f32 %v1474_v4, %v1334_v16 }
 0x891   : > { %1345 = vadd.xlane.f32.xlu0 %v1344_v3  ;;  %v1337_v18 = vsel %vm693_vm7, %v1336_v17, 0.0 }
 0x892   : > { %1338 = vadd.xlane.f32.xlu1 %v1337_v18 }
 0x8a3   : > { %1410 = vbcast.lane.b32.xlu1 %v1408_v15, 256 }
 0x8a7   : > { %1403 = vbcast.lane.b32.xlu0 %v1401_v53, 256 }
 0x91a   : > { %v1373_v19 = vpop.xlane.xlu0 %1372 }
 0x91b   : > { %v1374_v20 = vsub.f32 %v1813_v26, %v1373_v19 }
 0x91d   : > { %v1375_v21 = vsel %vm1369_vm4, %v1763_v1, %v1374_v20 }
 0x91e   : > { %1377 = vst.msk [vmem:[#allocation4] sm:$0x3] %vm1376_vm0, %v1375_v21  ;;  %1390 = vperm.xlu0 %1618, %v1375_v21   ;;  %v1346_v22 = vpop.xlane.xlu0 %1345 }
 0x91f   : > { %v1339_v24 = vpop.xlane.xlu1 %1338  ;;  %vm1347_vm9 = vcmp.ge.f32.partialorder %v1346_v22, 7.0 }
 0x920   : > { %1638 = vlog2.f32 %v1339_v24  ;;  %v1476_v29 = vsel %vm1347_vm9, 1.0, %v1652_v23 }
 0x921   : > { %v1352_v34 = vsub.f32 1.0, %v1476_v29 }
 0x922   : > { %v1404_v25 = vpop.permute.xlu0 %1403 }
 0x923   : > { %v1414_v26 = vmul.f32 %v1412_v56, %v1404_v25  ;;  %v1411_v27 = vpop.permute.xlu1 %1410 }
 0x924   : > { %v1415_v28 = vmul.f32 %v1413_v55, %v1411_v27 }
 0x925   : > { %v1416_v1 = vsel %vm526_vm6, %v1414_v26, 0.0 }
 0x926   : > { %v1417_v30 = vrot.slane %v1416_v1, 4  ;;  %v1423_v31 = vsel %vm526_vm6, %v1415_v28, 0.0 }
 0x927   : > { %v1424_v32 = vrot.slane %v1423_v31, 4 }
 0x928   : > { %v1418_v33 = vadd.f32 %v1417_v30, %v1416_v1 }
 0x929   : > { %v1425_v35 = vadd.f32 %v1424_v32, %v1423_v31 }
 0x92a   : > { %v1639_v36 = vpop.eup %1638  ;;  %v1419_v37 = vrot.slane %v1418_v33, 2 }
 0x92b   : > { %v1351_v38 = vmul.f32 0.6931472, %v1639_v36  ;;  %v1426_v39 = vrot.slane %v1425_v35, 2 }
 0x92c   : > { %v1420_v40 = vadd.f32 %v1419_v37, %v1418_v33 }
 0x92d   : > { %v1353_v41 = vmul.f32 %v1352_v34, %v1351_v38  ;;  %v1427_v42 = vadd.f32 %v1426_v39, %v1425_v35 }
 0x92e   : > { %v1421_v43 = vrot.slane %v1420_v40, 1 }
 0x92f   : > { %v1365_v44 = vrot.slane %v1353_v41, %v1941_v57  ;;  %v1428_v45 = vrot.slane %v1427_v42, 1 }
 0x930   : > { %v1422_v46 = vadd.f32 %v1421_v43, %v1420_v40 }
 0x931   : > { %1368 = vst.msk [vmem:[%s1367_s21] sm:$0x1] %vm1359_vm2, %v1365_v44  ;;  %v1429_v47 = vadd.f32 %v1428_v45, %v1427_v42 }
 0x933   : > { %v1432_v48 = vsel %vm1064_vm12, %v1429_v47, %v1422_v46 }
 0x934   : > { %1434 = vst.msk [vmem:[#allocation6] sm:$0x3] %vm691_vm8, %v1432_v48 }
 0x99d   : > { %v1391_v49 = vpop.permute.xlu0 %1390 }
 0x99e   : > { %vm1393_vm6 = vcmp.gt.f32.partialorder %v1758_v0, %v1391_v49 }
 0x99f   : > { %v1478_v50 = vsel %vm1393_vm6, 1.0, %v1652_v23 }
 0x9a0   : > { %v1396_v51 = vmax.f32 %v1386_v14, %v1478_v50 }
 0x9a2   : > { %1397 = vst.msk [vmem:[#allocation3] sm:$0x3] %vm693_vm7, %v1396_v51 }
 0x9a3 PF: > { %s29_s24 = sadd.s32 1, %s1646_s24  }
 0x9a4   : > { %p26_p5 = scmp.ge.s32.totalorder %s29_s24, 8  }
 0x9a6   :  { %28 = sbr.rel (!%p26_p5) target bundleno = 2 (0x2), region = 117 }

</bundles_post_ra>
